<compile_context>
chip_gen: v6e
topology: v6e:2x2x1
jax: 0.10.0
libtpu: 0.0.40
codegen_flags: <defaults>
</compile_context>

<pallas_src>
import functools
import math

import jax
import jax.numpy as jnp
from jax.experimental import pallas as pl
from jax.experimental.pallas import tpu as pltpu


def _make_pe(d_model: int, max_len: int) -> jnp.ndarray:
    """Sinusoidal positional-encoding buffer, matching PositionalEncoding.__init__
    exactly: shape (max_len, 1, d_model), float32.  (Buffer init lives outside the
    forward, so it is plain JAX, not part of the kernel.)"""
    position = jnp.arange(0, max_len, dtype=jnp.float32)[:, None]            # (L, 1)
    div_term = jnp.exp(
        jnp.arange(0, d_model, 2, dtype=jnp.float32)
        * (-math.log(10000.0) / d_model)
    )                                                                         # (D/2,)
    angles = position * div_term                                              # (L, D/2)
    pe = jnp.zeros((max_len, d_model), dtype=jnp.float32)
    pe = pe.at[:, 0::2].set(jnp.sin(angles))
    pe = pe.at[:, 1::2].set(jnp.cos(angles))
    return pe[:, None, :]                                                     # (L, 1, D)


def _add_pe_kernel(x_ref, pe_ref, o_ref, *, groups: int, d_model: int):
    # x_ref / o_ref : (tile_s, groups * d_model)   current (seq, batch-group) tile
    # pe_ref        : (tile_s, d_model) float32    matching rows of the pe table
    pe = pe_ref[...].astype(jnp.float32)
    for g in range(groups):
        # Static, lane-aligned slices (d_model is a multiple of 128): plain
        # vreg-width adds, no concatenated pe temp, no extra stores.
        sl = slice(g * d_model, (g + 1) * d_model)
        o_ref[:, sl] = (x_ref[:, sl].astype(jnp.float32) + pe).astype(o_ref.dtype)


def positional_encoding_forward(x, pe, *, tile_s=None, groups_per_block=None,
                                target_block_bytes=2 << 20):
    """x: (seq_len, batch, d_model); pe: (max_len, 1, d_model) float32 buffer.
    Returns x + pe[:seq_len] (broadcast over batch), computed in a Pallas kernel."""
    seq_len, batch, d_model = x.shape
    max_len = pe.shape[0]
    assert seq_len <= max_len, "seq_len must not exceed max_len"
    itemsize = jnp.dtype(x.dtype).itemsize

    # Layout-only (free) reshapes; no dtype convert / slice pass over pe.
    x2 = x.reshape(seq_len, batch * d_model)
    pe2 = pe.reshape(max_len, d_model)

    # ---- lane (batch-group) tiling: blocks are multiples of d_model lanes ----
    if groups_per_block is None:
        if d_model % 128 == 0:
            # groups that keep an 8-row block near target_block_bytes
            groups_per_block = max(
                1, min(batch, target_block_bytes // (8 * d_model * itemsize)))
        else:
            groups_per_block = batch  # lane dim must stay full extent
    groups_per_block = max(1, min(groups_per_block, batch))
    lane_block = groups_per_block * d_model

    # ---- seq tiling: ~target_block_bytes per x block, sublane (8) aligned ----
    if tile_s is None:
        row_bytes = lane_block * itemsize
        tile_s = max(8, (target_block_bytes // max(row_bytes, 1)) // 8 * 8)
    if tile_s >= seq_len:
        if seq_len % 8 == 0 or seq_len == max_len:
            tile_s = seq_len                       # full-extent block (both x and pe)
        elif seq_len >= 8:
            tile_s = (seq_len // 8) * 8            # 8-aligned, ragged last block
        else:
            tile_s = seq_len                       # tiny seq: make pe full-extent too
            pe2 = pe2[:seq_len]
    else:
        tile_s = max(8, (tile_s // 8) * 8)         # keep the sublane dim 8-aligned

    grid = (pl.cdiv(seq_len, tile_s), pl.cdiv(batch, groups_per_block))

    out2 = pl.pallas_call(
        functools.partial(_add_pe_kernel, groups=groups_per_block, d_model=d_model),
        out_shape=jax.ShapeDtypeStruct((seq_len, batch * d_model), x.dtype),
        grid=grid,
        in_specs=[
            pl.BlockSpec((tile_s, lane_block), lambda i, j: (i, j)),
            pl.BlockSpec((tile_s, d_model), lambda i, j: (i, 0)),
        ],
        out_specs=pl.BlockSpec((tile_s, lane_block), lambda i, j: (i, j)),
        compiler_params=pltpu.CompilerParams(
            dimension_semantics=("parallel", "parallel")),
        # No input_output_aliases: x is not donated, aliasing would trigger a
        # defensive copy (extra full HBM pass) for this BW-bound op.
    )(x2, pe2)

    return out2.reshape(seq_len, batch, d_model)


if __name__ == "__main__":
    d_model = 512
    max_len = 10
    seq_len = 10
    batch = 2

    key = jax.random.PRNGKey(0)
    x = jax.random.normal(key, (seq_len, batch, d_model), dtype=jnp.float32)
    pe = _make_pe(d_model, max_len)
    ref = x + pe[:seq_len]

    # 1) Default path: auto-sized (single full-extent) block.
    out = jax.block_until_ready(positional_encoding_forward(x, pe))
    assert out.shape == (seq_len, batch, d_model)
    assert jnp.allclose(out, ref, atol=1e-6), "mismatch vs reference (default)"

    # 2) Multi-block seq path (tile_s=8 -> 2 seq tiles incl. a ragged edge).
    out2 = jax.block_until_ready(positional_encoding_forward(x, pe, tile_s=8))
    assert jnp.allclose(out2, ref, atol=1e-6), "mismatch vs reference (seq tiles)"

    # 3) Lane-tiled path (one batch group per block -> 2 lane tiles).
    out3 = jax.block_until_ready(
        positional_encoding_forward(x, pe, groups_per_block=1))
    assert jnp.allclose(out3, ref, atol=1e-6), "mismatch vs reference (lane tiles)"

    print("KERNEL_OK")
</pallas_src>

<mosaic_0001>
module attributes {stable_mosaic.version = 11 : i64} {
  func.func @_add_pe_kernel(%arg0: i32, %arg1: i32, %arg2: memref<10x1024xf32, #tpu.memory_space<vmem>>, %arg3: memref<10x512xf32, #tpu.memory_space<vmem>>, %arg4: memref<10x1024xf32, #tpu.memory_space<vmem>>) attributes {dimension_semantics = [#tpu.dimension_semantics<parallel>, #tpu.dimension_semantics<parallel>], iteration_bounds = array<i64: 1, 1>, scalar_prefetch = 0 : i64, scratch_operands = 0 : i64, tpu.core_type = #tpu.core_type<tc>, window_params = [{transform_indices = @transform_0, window_bounds = array<i64: 10, 1024>}, {transform_indices = @transform_1, window_bounds = array<i64: 10, 512>}, {transform_indices = @transform_2, window_bounds = array<i64: 10, 1024>}]} {
    %c0 = arith.constant 0 : index
    %c0_0 = arith.constant 0 : index
    %0 = vector.load %arg3[%c0, %c0_0] : memref<10x512xf32, #tpu.memory_space<vmem>>, vector<10x512xf32>
    %c0_1 = arith.constant 0 : index
    %c0_2 = arith.constant 0 : index
    %1 = vector.load %arg2[%c0_1, %c0_2] : memref<10x1024xf32, #tpu.memory_space<vmem>>, vector<10x512xf32>
    %2 = arith.addf %1, %0 : vector<10x512xf32>
    %c0_3 = arith.constant 0 : index
    %c0_4 = arith.constant 0 : index
    %3 = vector.load %arg4[%c0_3, %c0_4] : memref<10x1024xf32, #tpu.memory_space<vmem>>, vector<10x512xf32>
    tpu.vector_store %arg4[%c0_3, %c0_4], %2 {strides = array<i32>} : memref<10x1024xf32, #tpu.memory_space<vmem>>, vector<10x512xf32>,
    %c0_5 = arith.constant 0 : index
    %c512 = arith.constant 512 : index
    %4 = vector.load %arg2[%c0_5, %c512] : memref<10x1024xf32, #tpu.memory_space<vmem>>, vector<10x512xf32>
    %5 = arith.addf %4, %0 : vector<10x512xf32>
    %c0_6 = arith.constant 0 : index
    %c512_7 = arith.constant 512 : index
    %6 = vector.load %arg4[%c0_6, %c512_7] : memref<10x1024xf32, #tpu.memory_space<vmem>>, vector<10x512xf32>
    tpu.vector_store %arg4[%c0_6, %c512_7], %5 {strides = array<i32>} : memref<10x1024xf32, #tpu.memory_space<vmem>>, vector<10x512xf32>,
    return
  }
  func.func @transform_0(%arg0: i32, %arg1: i32) -> (i32, i32) {
    %c0_i32 = arith.constant 0 : i32
    return %arg0, %arg1 : i32, i32
  }
  func.func @transform_1(%arg0: i32, %arg1: i32) -> (i32, i32) {
    %c0_i32 = arith.constant 0 : i32
    %c0_i32_0 = arith.constant 0 : i32
    return %arg0, %c0_i32 : i32, i32
  }
  func.func @transform_2(%arg0: i32, %arg1: i32) -> (i32, i32) {
    %c0_i32 = arith.constant 0 : i32
    return %arg0, %arg1 : i32, i32
  }
}

</mosaic_0001>

<bundles_post_ra>
// kernel: tpu_custom_call.1
= control target key start
LH: loop header
LB: loop body
LE: loop exit
PB: predicated region body
PF: predicated region fallthrough
CT: control target
= control target key end

     0   :  { %7 = vsyncpa [#allocation3], 0  ;;  %s224_s0 = inlined_call_operand.hbm [shape: f32[10,1024], index: 0, kind: input, shape index: {}]   ;;  %s225_s1 = inlined_call_operand.hbm [shape: f32[10,512], index: 1, kind: input, shape index: {}]   ;;  %s226_s2 = inlined_call_operand.hbm [shape: f32[10,1024], index: 2, kind: output, shape index: {}]  }
   0x1   :  { %8 = vsyncpa [#allocation6], 0 }
   0x2   :  { %9 = vsyncpa [#allocation4], 0  ;;  %s187_s9 = smov [#allocation2]  }
   0x3   :  { %s15_s10 = sshll.u32 %s187_s9, 4  ;;  %s16_s10 = int_to_ptr.vmem [resolvable:$true] %s15_s10 }
   0x4   :  { %s129_s11 = scalar_lea.vmem %s16_s10, 2048  ;;  %p134_p1 = scmp.lt.s32.totalorder %s16_s10, %s16_s10 }
   0x5   :  { %p130_p0 = scmp.ne.s32.totalorder %s16_s10, %s129_s11  ;;  %p135_p2 = scmp.lt.s32.totalorder %s129_s11, %s129_s11 }
   0x7   :  { %p136_p3 = por %p135_p2, %p134_p1 }
   0x9   :  { %p137_p4 = pnand %p136_p3, %p130_p0 }
   0xb   :  { %140 = shalt.err (!%p137_p4)
}
   0xc   :  { %s188_s12 = smov 1024   ;;  %s189_s13 = smov 64  }
   0xd   :  { %21 = dma.hbm_to_vmem [thread:$0]  %s224_s0, 2048, %s16_s10, [#allocation3], %s188_s12, %s188_s12, %s189_s13  }
   0xe   :  { %s190_s16 = smov [#allocation5]  }
   0xf   :  { %s27_s17 = sshll.u32 %s190_s16, 4  ;;  %s28_s17 = int_to_ptr.vmem [resolvable:$true] %s27_s17 }
  0x10   :  { %s149_s18 = scalar_lea.vmem %s28_s17, 1024  ;;  %p154_p6 = scmp.lt.s32.totalorder %s28_s17, %s28_s17 }
  0x11   :  { %p150_p5 = scmp.ne.s32.totalorder %s28_s17, %s149_s18  ;;  %p155_p7 = scmp.lt.s32.totalorder %s149_s18, %s149_s18 }
  0x13   :  { %p156_p8 = por %p155_p7, %p154_p6 }
  0x15   :  { %p157_p9 = pnand %p156_p8, %p150_p5 }
  0x17   :  { %160 = shalt.err (!%p157_p9)
}
  0x18   :  { %s191_s19 = smov 512   ;;  %s192_s20 = smov 32  }
  0x19   :  { %33 = dma.hbm_to_vmem [thread:$0]  %s225_s1, 1024, %s28_s17, [#allocation6], %s191_s19, %s191_s19, %s192_s20  }
  0x1a   :  { %181 = dma.done.wait [#allocation3], 2048  }
  0x1b   :  { %182 = vsyncadd [#allocation3], 4294965248 }
  0x1c   :  { %183 = dma.done.wait [#allocation6], 1024  }
  0x1d   :  { %184 = vsyncadd [#allocation6], 4294966272  ;;  %v40_v0 = vld [vmem:[#allocation5] sm:$0xff]  ;;  %v41_v2 = vld [vmem:[#allocation5 + $0x8] sm:$0xff]  ;;  %s193_s0 = smov [#allocation7]  }
  0x1e   :  { %v48_v1 = vld [vmem:[#allocation2] sm:$0xff]  ;;  %v49_v4 = vld [vmem:[#allocation2 + $0x8] sm:$0xff]  ;;  %v42_v5 = vld [vmem:[#allocation5 + $0x10] sm:$0xff]  ;;  %s101_s1 = sshll.u32 %s193_s0, 4  ;;  %s102_s1 = int_to_ptr.vmem [resolvable:$true] %s101_s1 }
  0x1f   :  { %v56_v3 = vadd.f32 %v48_v1, %v40_v0  ;;  %v50_v6 = vld [vmem:[#allocation2 + $0x10] sm:$0xff]  ;;  %v57_v7 = vadd.f32 %v49_v4, %v41_v2  ;;  %v43_v9 = vld [vmem:[#allocation5 + $0x18] sm:$0xff]  ;;  %v44_v11 = vld [vmem:[#allocation5 + $0x20] sm:$0x3]  ;;  %s161_s23 = scalar_lea.vmem %s102_s1, 2048  ;;  %p166_p11 = scmp.lt.s32.totalorder %s102_s1, %s102_s1 }
  0x20   :  { %v58_v8 = vadd.f32 %v50_v6, %v42_v5  ;;  %v51_v10 = vld [vmem:[#allocation2 + $0x18] sm:$0xff]  ;;  %v52_v13 = vld [vmem:[#allocation2 + $0x40] sm:$0x3]  ;;  %v45_v14 = vld [vmem:[#allocation5 + $0x28] sm:$0x3]  ;;  %p162_p10 = scmp.ne.s32.totalorder %s102_s1, %s161_s23  ;;  %p167_p12 = scmp.lt.s32.totalorder %s161_s23, %s161_s23 }
  0x21   :  { %64 = vst [vmem:[#allocation7] sm:$0xff] %v56_v3  ;;  %v59_v12 = vadd.f32 %v51_v10, %v43_v9  ;;  %v53_v15 = vld [vmem:[#allocation2 + $0x48] sm:$0x3]  ;;  %65 = vst [vmem:[#allocation7 + $0x8] sm:$0xff] %v57_v7  ;;  %v60_v16 = vadd.f32 %v52_v13, %v44_v11  ;;  %v46_v18 = vld [vmem:[#allocation5 + $0x30] sm:$0x3] }
  0x22   :  { %66 = vst [vmem:[#allocation7 + $0x10] sm:$0xff] %v58_v8  ;;  %v61_v17 = vadd.f32 %v53_v15, %v45_v14  ;;  %v54_v19 = vld [vmem:[#allocation2 + $0x50] sm:$0x3]  ;;  %v47_v20 = vld [vmem:[#allocation5 + $0x38] sm:$0x3]  ;;  %v72_v23 = vld [vmem:[#allocation2 + $0x20] sm:$0xff]  ;;  %p168_p13 = por %p167_p12, %p166_p11 }
  0x23   :  { %67 = vst [vmem:[#allocation7 + $0x18] sm:$0xff] %v59_v12  ;;  %v62_v21 = vadd.f32 %v54_v19, %v46_v18  ;;  %v55_v22 = vld [vmem:[#allocation2 + $0x58] sm:$0x3]  ;;  %v73_v24 = vld [vmem:[#allocation2 + $0x28] sm:$0xff]  ;;  %68 = vst [vmem:[#allocation7 + $0x40] sm:$0x3] %v60_v16  ;;  %v80_v26 = vadd.f32 %v72_v23, %v40_v0 }
  0x24   :  { %69 = vst [vmem:[#allocation7 + $0x48] sm:$0x3] %v61_v17  ;;  %v63_v25 = vadd.f32 %v55_v22, %v47_v20  ;;  %v81_v27 = vadd.f32 %v73_v24, %v41_v2  ;;  %v74_v28 = vld [vmem:[#allocation2 + $0x30] sm:$0xff]  ;;  %v75_v29 = vld [vmem:[#allocation2 + $0x38] sm:$0xff]  ;;  %v76_v30 = vld [vmem:[#allocation2 + $0x60] sm:$0x3]  ;;  %p169_p0 = pnand %p168_p13, %p162_p10 }
  0x25   :  { %70 = vst [vmem:[#allocation7 + $0x50] sm:$0x3] %v62_v21  ;;  %v82_v31 = vadd.f32 %v74_v28, %v42_v5  ;;  %v83_v32 = vadd.f32 %v75_v29, %v43_v9  ;;  %v84_v33 = vadd.f32 %v76_v30, %v44_v11  ;;  %v77_v34 = vld [vmem:[#allocation2 + $0x68] sm:$0x3]  ;;  %v78_v35 = vld [vmem:[#allocation2 + $0x70] sm:$0x3] }
  0x26   :  { %v79_v36 = vld [vmem:[#allocation2 + $0x78] sm:$0x3]  ;;  %71 = vst [vmem:[#allocation7 + $0x58] sm:$0x3] %v63_v25  ;;  %88 = vst [vmem:[#allocation7 + $0x20] sm:$0xff] %v80_v26  ;;  %v85_v37 = vadd.f32 %v77_v34, %v45_v14  ;;  %v86_v38 = vadd.f32 %v78_v35, %v46_v18 }
  0x27   :  { %89 = vst [vmem:[#allocation7 + $0x28] sm:$0xff] %v81_v27  ;;  %v87_v39 = vadd.f32 %v79_v36, %v47_v20  ;;  %90 = vst [vmem:[#allocation7 + $0x30] sm:$0xff] %v82_v31 }
  0x28   :  { %91 = vst [vmem:[#allocation7 + $0x38] sm:$0xff] %v83_v32  ;;  %92 = vst [vmem:[#allocation7 + $0x60] sm:$0x3] %v84_v33 }
  0x29   :  { %93 = vst [vmem:[#allocation7 + $0x68] sm:$0x3] %v85_v37  ;;  %94 = vst [vmem:[#allocation7 + $0x70] sm:$0x3] %v86_v38 }
  0x2a   :  { %95 = vst [vmem:[#allocation7 + $0x78] sm:$0x3] %v87_v39 }
  0x2b   :  { %172 = shalt.err (!%p169_p0)
}
  0x2c   :  { %107 = dma.vmem_to_hbm [thread:$0]  %s102_s1, 2048, %s226_s2, [#allocation4], %s188_s12, %s188_s12, %s189_s13  }
  0x2d   :  { %185 = dma.done.wait [#allocation4], 2048  }
  0x2e   :  { %186 = vsyncadd [#allocation4], 4294965248 }
  0x2f   :  { %111 = vsyncpa [#allocation3], 1 }
  0x30   :  { %112 = vsyncpa [#allocation6], 1 }
  0x31   :  { %113 = vsyncpa [#allocation4], 1 }

</bundles_post_ra>
